<compile_context>
chip_gen: v7x
topology: tpu7x:2x2x1
jax: 0.10.0
libtpu: 0.0.40
codegen_flags: <defaults>
</compile_context>

<pallas_src>
import math

import jax
import jax.numpy as jnp
from jax import lax
from jax.experimental import pallas as pl
from jax.experimental.pallas import tpu as pltpu


def _mha_kernel(x_ref, sym_ref, wqv_ref, wk_ref, wo_ref, bq_ref, bo_ref,
                out_ref, q_scr, k_scr, v_scr):
    # x_ref, sym_ref: [1, E, S] f32 (full per-batch blocks, resident across q-tiles)
    # wqv_ref: [2E, E] bf16 (rows 0..E-1 = Wq/sqrt(E), rows E..2E-1 = Wv)
    # wk_ref, wo_ref: [E, E] bf16;  bq_ref, bo_ref: [E, 1] f32 (bq scaled; bo' = bo + Wo@bv)
    # out_ref: [1, E, TQ];  q_scr/k_scr/v_scr: [E, S] bf16 VMEM scratch (per-batch cache)
    qi = pl.program_id(1)
    e = q_scr.shape[0]
    tq = out_ref.shape[2]
    dn_nn = (((1,), (0,)), ((), ()))   # canonical matmul
    dn_nt = (((1,), (1,)), ((), ()))   # contract last dim of both (rhs "transposed")
    dn_tn = (((0,), (0,)), ((), ()))   # contract first dim of both (lhs "transposed")

    @pl.when(qi == 0)
    def _():
        # Per-batch projection pass, cached in VMEM scratch for all q-tiles.
        x = x_ref[0].astype(jnp.bfloat16)        # [E, S]
        sym = sym_ref[0].astype(jnp.bfloat16)    # [E, S]
        k = lax.dot_general(wk_ref[...], sym, dn_nn,
                            preferred_element_type=jnp.float32)      # bk dropped
        k_scr[...] = k.astype(jnp.bfloat16)
        qv = lax.dot_general(wqv_ref[...], x, dn_nn,
                             preferred_element_type=jnp.float32)     # [2E, S], stacked
        q_scr[...] = (qv[:e] + bq_ref[...]).astype(jnp.bfloat16)
        v_scr[...] = qv[e:].astype(jnp.bfloat16)                     # bv folded into bo'

    # q tile [E, TQ] sliced from the cached per-batch projection (no extra HBM stream).
    q_start = pl.multiple_of(qi * tq, tq)
    q_t = q_scr[:, pl.ds(q_start, tq)]

    # scores [TQ, S] = q_t^T @ k   (only the small [E, TQ] operand is transposed)
    s = lax.dot_general(q_t, k_scr[...], dn_tn,
                        preferred_element_type=jnp.float32)
    s = s - jnp.max(s, axis=-1, keepdims=True)
    p = jnp.exp(s)                                  # f32 exp (portable: v5e has no bf16 EUP)
    l = jnp.sum(p, axis=-1, keepdims=True)          # [TQ, 1] f32 row-sums

    # un-normalized context [TQ, E] = p @ v^T   (big [TQ, S] operand stays canonical)
    ctx = lax.dot_general(p.astype(jnp.bfloat16), v_scr[...], dn_nt,
                          preferred_element_type=jnp.float32)
    # normalize AFTER the PV matmul: a [TQ, E] * [TQ, 1] multiply instead of [TQ, S]
    ctx = ctx * pl.reciprocal(l)                    # exact reciprocal; approx not needed

    # output projection back to channel-major: [E, TQ] = Wo @ ctx^T + bo'
    out = lax.dot_general(wo_ref[...], ctx.astype(jnp.bfloat16), dn_nt,
                          preferred_element_type=jnp.float32) + bo_ref[...]
    out_ref[0] = out.astype(out_ref.dtype)


def _tpu_vmem_capacity_bytes():
    try:
        return int(pltpu.get_tpu_info().vmem_capacity_bytes)
    except Exception:
        return 64 << 20            # conservative (v7x-sized) fallback


def _vmem_estimate(e, s_len, q_tile, full_buffers):
    f32, bf16 = 4, 2
    blocks = (full_buffers * 2 * e * s_len * f32      # x + symbol full blocks
              + 2 * e * q_tile * f32)                 # output tile (double-buffered)
    scratch = 3 * e * s_len * bf16                    # cached q / k / v projections
    work = (2 * e * s_len * bf16                      # bf16 casts of x / sym
            + 2 * e * s_len * f32                     # stacked qv f32 intermediate
            + 2 * q_tile * s_len * f32                # scores + exp(p) in f32
            + q_tile * s_len * bf16                   # p bf16 cast for the PV matmul
            + 4 * e * q_tile * f32)                   # q-tile / ctx / out temporaries
    weights = 4 * e * e * bf16 + 2 * e * f32
    return blocks + scratch + work + weights


def _pick_q_tile(e, s_len, vmem_cap, full_buffers):
    if s_len % 128 != 0:
        # TODO(synk): pad S to a multiple of 128 for such shapes to avoid masked stores.
        return s_len
    cands = (512, 256, 128)
    if vmem_cap <= (64 << 20) and s_len >= 4096:
        cands = (256, 128)         # v7x: the f32 [TQ, S] scores dominate VMEM at large S
    budget = int(vmem_cap * 0.8)
    for tq in cands:
        if s_len % tq == 0 and _vmem_estimate(e, s_len, tq, full_buffers) <= budget:
            return tq
    return 128


def _vmem_limit_bytes(e, s_len, q_tile, vmem_cap, full_buffers):
    est = int(_vmem_estimate(e, s_len, q_tile, full_buffers) * 1.3) + (2 << 20)
    cap = int(vmem_cap * 0.85)     # ~54 MiB on v7x (64 MiB), ~109 MiB on v5e/v6e (128 MiB)
    return max(min(est, cap), 32 << 20)


def symbol_mha_pallas(x, symbol, params):
    """x, symbol: [n, c, h, w, l] float32.  Returns [n, c, h, w, l]."""
    assert x.shape == symbol.shape, "input and symbol should have same shape"
    n, c, h, w, l = x.shape
    e = c
    s_len = h * w * l

    # Channel-major [n, E, S]: pure reshape, no HBM transpose.
    x_cm = x.reshape(n, e, s_len)
    sym_cm = symbol.reshape(n, e, s_len)

    # Trace-time weight prep (all exact rewrites of the reference math):
    #   fold 1/sqrt(E) into Wq/bq, stack Wq_scaled on Wv, drop bk, fold bv into bo.
    scale = 1.0 / math.sqrt(e)
    w_qv = jnp.concatenate([params["wq"] * scale, params["wv"]], axis=0).astype(jnp.bfloat16)
    wk = params["wk"].astype(jnp.bfloat16)
    wo = params["wo"].astype(jnp.bfloat16)
    bq = (params["bq"] * scale).reshape(e, 1).astype(jnp.float32)
    bo = (params["bo"] + params["wo"] @ params["bv"]).reshape(e, 1).astype(jnp.float32)

    vmem_cap = _tpu_vmem_capacity_bytes()
    # The big per-batch [1, E, S] blocks change block index only once per batch,
    # so double-buffering buys nothing once they are large; single-buffer them.
    full_buffers = 1 if (2 * 2 * e * s_len * 4) > (8 << 20) else 2
    q_tile = _pick_q_tile(e, s_len, vmem_cap, full_buffers)
    num_q = s_len // q_tile
    grid = (n, num_q)

    full_kwargs = dict(pipeline_mode=pl.Buffered(1)) if full_buffers == 1 else {}
    full_spec = pl.BlockSpec((1, e, s_len), lambda b, qi: (b, 0, 0), **full_kwargs)
    out_spec = pl.BlockSpec((1, e, q_tile), lambda b, qi: (b, 0, qi))
    wqv_spec = pl.BlockSpec((2 * e, e), lambda b, qi: (0, 0))
    mat_spec = pl.BlockSpec((e, e), lambda b, qi: (0, 0))
    vec_spec = pl.BlockSpec((e, 1), lambda b, qi: (0, 0))

    out_cm = pl.pallas_call(
        _mha_kernel,
        out_shape=jax.ShapeDtypeStruct((n, e, s_len), x.dtype),
        grid_spec=pltpu.PrefetchScalarGridSpec(
            num_scalar_prefetch=0,
            grid=grid,
            in_specs=[full_spec, full_spec, wqv_spec, mat_spec, mat_spec,
                      vec_spec, vec_spec],
            out_specs=out_spec,
            scratch_shapes=[pltpu.VMEM((e, s_len), jnp.bfloat16),   # q (scaled, +bq)
                            pltpu.VMEM((e, s_len), jnp.bfloat16),   # k
                            pltpu.VMEM((e, s_len), jnp.bfloat16)],  # v
        ),
        compiler_params=pltpu.CompilerParams(
            # q axis must be "arbitrary" so the qi==0 projection cache is built
            # before the other q-tiles of the same batch; batch stays "parallel"
            # for the megacore split (n >= 2).  For n == 1 on v7x, an SMEM
            # "already-computed" flag would let the q axis stay parallel.
            dimension_semantics=("parallel", "arbitrary"),
            vmem_limit_bytes=_vmem_limit_bytes(e, s_len, q_tile, vmem_cap, full_buffers),
        ),
    )(x_cm, sym_cm, w_qv, wk, wo, bq, bo)

    # Pure reshape back to [n, c, h, w, l] (still no transpose).
    return out_cm.reshape(n, c, h, w, l)


def _reference_jax(x, symbol, params):
    """Plain-JAX (f32) reference identical to nn.MultiheadAttention(num_heads=1)."""
    n, c, h, w, l = x.shape
    s_len = h * w * l
    xq = jnp.transpose(x.reshape(n, c, s_len), (0, 2, 1))
    sk = jnp.transpose(symbol.reshape(n, c, s_len), (0, 2, 1))
    q = xq @ params["wq"].T + params["bq"]
    k = sk @ params["wk"].T + params["bk"]
    v = xq @ params["wv"].T + params["bv"]
    s = jnp.einsum("bqe,bke->bqk", q, k) / math.sqrt(c)
    p = jax.nn.softmax(s, axis=-1)
    ctx = jnp.einsum("bqk,bke->bqe", p, v)
    out = ctx @ params["wo"].T + params["bo"]
    return jnp.transpose(out, (0, 2, 1)).reshape(n, c, h, w, l)


def init_params(key, embed_dim):
    """Synthetic init mirroring nn.MultiheadAttention shapes:
    in_proj_weight [3E, E] (xavier-uniform-like), in_proj_bias zeros,
    out_proj.weight [E, E], out_proj.bias zeros."""
    kq, kk, kv, ko = jax.random.split(key, 4)
    bound_in = math.sqrt(6.0 / (embed_dim + embed_dim))   # xavier_uniform
    bound_out = 1.0 / math.sqrt(embed_dim)
    uni = lambda k, b: jax.random.uniform(
        k, (embed_dim, embed_dim), jnp.float32, minval=-b, maxval=b)
    return {
        "wq": uni(kq, bound_in),
        "wk": uni(kk, bound_in),
        "wv": uni(kv, bound_in),
        "bq": jnp.zeros((embed_dim,), jnp.float32),
        "bk": jnp.zeros((embed_dim,), jnp.float32),
        "bv": jnp.zeros((embed_dim,), jnp.float32),
        "wo": uni(ko, bound_out),
        "bo": jnp.zeros((embed_dim,), jnp.float32),
    }


if __name__ == "__main__":
    # Small shapes consistent with the forward: [n, c, h, w, l], embed_dim = c.
    n, c, h, w, l = 2, 32, 4, 4, 8          # S = h*w*l = 128, E = 32

    key = jax.random.PRNGKey(0)
    kx, ks, kp = jax.random.split(key, 3)
    x = jax.random.normal(kx, (n, c, h, w, l), jnp.float32)
    symbol = jax.random.normal(ks, (n, c, h, w, l), jnp.float32)
    params = init_params(kp, c)

    out = symbol_mha_pallas(x, symbol, params)
    out = jax.block_until_ready(out)

    ref = _reference_jax(x, symbol, params)
    assert out.shape == (n, c, h, w, l)
    # bf16 MXU operands (f32 accumulation) => loosened tolerance vs the f32 reference.
    assert jnp.allclose(out, ref, atol=2e-2, rtol=2e-2), "mismatch vs reference"

    print("KERNEL_OK")
</pallas_src>

<mosaic_0001>
module attributes {stable_mosaic.version = 11 : i64} {
  func.func @_mha_kernel(%arg0: i32, %arg1: i32, %arg2: memref<1x32x128xf32, #tpu.memory_space<vmem>>, %arg3: memref<1x32x128xf32, #tpu.memory_space<vmem>>, %arg4: memref<64x32xbf16, #tpu.memory_space<vmem>>, %arg5: memref<32x32xbf16, #tpu.memory_space<vmem>>, %arg6: memref<32x32xbf16, #tpu.memory_space<vmem>>, %arg7: memref<32x1xf32, #tpu.memory_space<vmem>>, %arg8: memref<32x1xf32, #tpu.memory_space<vmem>>, %arg9: memref<1x32x128xf32, #tpu.memory_space<vmem>>, %arg10: memref<32x128xbf16, #tpu.memory_space<vmem>>, %arg11: memref<32x128xbf16, #tpu.memory_space<vmem>>, %arg12: memref<32x128xbf16, #tpu.memory_space<vmem>>) attributes {dimension_semantics = [#tpu.dimension_semantics<parallel>, #tpu.dimension_semantics<arbitrary>], iteration_bounds = array<i64: 2, 1>, scalar_prefetch = 0 : i64, scratch_operands = 3 : i64, tpu.core_type = #tpu.core_type<tc>, window_params = [{transform_indices = @transform_0, window_bounds = array<i64: 1, 32, 128>}, {transform_indices = @transform_1, window_bounds = array<i64: 1, 32, 128>}, {pipeline_mode = #tpu.pipeline_mode<synchronous>, transform_indices = @transform_2, window_bounds = array<i64: 64, 32>}, {pipeline_mode = #tpu.pipeline_mode<synchronous>, transform_indices = @transform_3, window_bounds = array<i64: 32, 32>}, {pipeline_mode = #tpu.pipeline_mode<synchronous>, transform_indices = @transform_4, window_bounds = array<i64: 32, 32>}, {pipeline_mode = #tpu.pipeline_mode<synchronous>, transform_indices = @transform_5, window_bounds = array<i64: 32, 1>}, {pipeline_mode = #tpu.pipeline_mode<synchronous>, transform_indices = @transform_6, window_bounds = array<i64: 32, 1>}, {transform_indices = @transform_7, window_bounds = array<i64: 1, 32, 128>}]} {
    %c0_i32 = arith.constant 0 : i32
    %0 = arith.cmpi eq, %arg1, %c0_i32 : i32
    %1 = arith.extui %0 : i1 to i32
    %c0_i32_0 = arith.constant 0 : i32
    %2 = arith.cmpi ne, %1, %c0_i32_0 : i32
    scf.if %2 {
      %c0_16 = arith.constant 0 : index
      %c0_17 = arith.constant 0 : index
      %c0_18 = arith.constant 0 : index
      %31 = vector.load %arg2[%c0_16, %c0_17, %c0_18] : memref<1x32x128xf32, #tpu.memory_space<vmem>>, vector<1x32x128xf32>
      %32 = vector.shape_cast %31 : vector<1x32x128xf32> to vector<32x128xf32>
      %33 = arith.truncf %32 : vector<32x128xf32> to vector<32x128xbf16>
      %c0_19 = arith.constant 0 : index
      %c0_20 = arith.constant 0 : index
      %c0_21 = arith.constant 0 : index
      %34 = vector.load %arg3[%c0_19, %c0_20, %c0_21] : memref<1x32x128xf32, #tpu.memory_space<vmem>>, vector<1x32x128xf32>
      %35 = vector.shape_cast %34 : vector<1x32x128xf32> to vector<32x128xf32>
      %36 = arith.truncf %35 : vector<32x128xf32> to vector<32x128xbf16>
      %c0_22 = arith.constant 0 : index
      %c0_23 = arith.constant 0 : index
      %37 = vector.load %arg5[%c0_22, %c0_23] : memref<32x32xbf16, #tpu.memory_space<vmem>>, vector<32x32xbf16>
      %cst_24 = arith.constant dense<0.000000e+00> : vector<32x128xf32>
      %38 = tpu.matmul %37, %36, %cst_24 {dimension_numbers = #tpu.dot_dimension_numbers<[1], [0], [0], [1], [0, 0, 1, 1], [], []>} : vector<32x32xbf16>, vector<32x128xbf16>, vector<32x128xf32> -> vector<32x128xf32>
      %39 = arith.truncf %38 : vector<32x128xf32> to vector<32x128xbf16>
      %c0_25 = arith.constant 0 : index
      %c0_26 = arith.constant 0 : index
      %40 = vector.load %arg11[%c0_25, %c0_26] : memref<32x128xbf16, #tpu.memory_space<vmem>>, vector<32x128xbf16>
      tpu.vector_store %arg11[%c0_25, %c0_26], %39 {strides = array<i32>} : memref<32x128xbf16, #tpu.memory_space<vmem>>, vector<32x128xbf16>,
      %c0_27 = arith.constant 0 : index
      %c0_28 = arith.constant 0 : index
      %41 = vector.load %arg4[%c0_27, %c0_28] : memref<64x32xbf16, #tpu.memory_space<vmem>>, vector<64x32xbf16>
      %cst_29 = arith.constant dense<0.000000e+00> : vector<64x128xf32>
      %42 = tpu.matmul %41, %33, %cst_29 {dimension_numbers = #tpu.dot_dimension_numbers<[1], [0], [0], [1], [0, 0, 1, 1], [], []>} : vector<64x32xbf16>, vector<32x128xbf16>, vector<64x128xf32> -> vector<64x128xf32>
      %43 = vector.extract_strided_slice %42 {offsets = [0, 0], sizes = [32, 128], strides = [1, 1]} : vector<64x128xf32> to vector<32x128xf32>
      %c0_30 = arith.constant 0 : index
      %c0_31 = arith.constant 0 : index
      %44 = vector.load %arg7[%c0_30, %c0_31] : memref<32x1xf32, #tpu.memory_space<vmem>>, vector<32x1xf32>
      %45 = vector.broadcast %44 : vector<32x1xf32> to vector<32x128xf32>
      %46 = arith.addf %43, %45 : vector<32x128xf32>
      %47 = arith.truncf %46 : vector<32x128xf32> to vector<32x128xbf16>
      %c0_32 = arith.constant 0 : index
      %c0_33 = arith.constant 0 : index
      %48 = vector.load %arg10[%c0_32, %c0_33] : memref<32x128xbf16, #tpu.memory_space<vmem>>, vector<32x128xbf16>
      tpu.vector_store %arg10[%c0_32, %c0_33], %47 {strides = array<i32>} : memref<32x128xbf16, #tpu.memory_space<vmem>>, vector<32x128xbf16>,
      %49 = vector.extract_strided_slice %42 {offsets = [32, 0], sizes = [32, 128], strides = [1, 1]} : vector<64x128xf32> to vector<32x128xf32>
      %50 = arith.truncf %49 : vector<32x128xf32> to vector<32x128xbf16>
      %c0_34 = arith.constant 0 : index
      %c0_35 = arith.constant 0 : index
      %51 = vector.load %arg12[%c0_34, %c0_35] : memref<32x128xbf16, #tpu.memory_space<vmem>>, vector<32x128xbf16>
      tpu.vector_store %arg12[%c0_34, %c0_35], %50 {strides = array<i32>} : memref<32x128xbf16, #tpu.memory_space<vmem>>, vector<32x128xbf16>,
    } else {
    }
    %c128_i32 = arith.constant 128 : i32
    %3 = arith.muli %arg1, %c128_i32 : i32
    %4 = tpu.assume_multiple %3, 128 : i32
    %c0 = arith.constant 0 : index
    %5 = arith.index_cast %4 : i32 to index
    %6 = vector.load %arg10[%c0, %5] : memref<32x128xbf16, #tpu.memory_space<vmem>>, vector<32x128xbf16>
    %c0_1 = arith.constant 0 : index
    %c0_2 = arith.constant 0 : index
    %7 = vector.load %arg11[%c0_1, %c0_2] : memref<32x128xbf16, #tpu.memory_space<vmem>>, vector<32x128xbf16>
    %cst = arith.constant dense<0.000000e+00> : vector<128x128xf32>
    %8 = tpu.matmul %6, %7, %cst {dimension_numbers = #tpu.dot_dimension_numbers<[0], [0], [1], [1], [0, 1, 1, 1], [], []>} : vector<32x128xbf16>, vector<32x128xbf16>, vector<128x128xf32> -> vector<128x128xf32>
    %cst_3 = arith.constant dense<0xFF800000> : vector<128xf32>
    %9 = vector.multi_reduction <maximumf>, %8, %cst_3 [1] : vector<128x128xf32> to vector<128xf32>
    %10 = vector.shape_cast %9 : vector<128xf32> to vector<128x1xf32>
    %11 = vector.broadcast %10 : vector<128x1xf32> to vector<128x128xf32>
    %12 = arith.subf %8, %11 : vector<128x128xf32>
    %13 = math.exp %12 : vector<128x128xf32>
    %cst_4 = arith.constant dense<0.000000e+00> : vector<128xf32>
    %14 = vector.multi_reduction <add>, %13, %cst_4 [1] : vector<128x128xf32> to vector<128xf32>
    %15 = vector.shape_cast %14 : vector<128xf32> to vector<128x1xf32>
    %16 = arith.truncf %13 : vector<128x128xf32> to vector<128x128xbf16>
    %c0_5 = arith.constant 0 : index
    %c0_6 = arith.constant 0 : index
    %17 = vector.load %arg12[%c0_5, %c0_6] : memref<32x128xbf16, #tpu.memory_space<vmem>>, vector<32x128xbf16>
    %cst_7 = arith.constant dense<0.000000e+00> : vector<128x32xf32>
    %18 = tpu.matmul %16, %17, %cst_7 {dimension_numbers = #tpu.dot_dimension_numbers<[1], [1], [0], [0], [0, 0, 1, 0], [], []>} : vector<128x128xbf16>, vector<32x128xbf16>, vector<128x32xf32> -> vector<128x32xf32>
    %19 = tpu.reciprocal %15 : vector<128x1xf32> -> vector<128x1xf32>
    %20 = vector.broadcast %19 : vector<128x1xf32> to vector<128x32xf32>
    %21 = arith.mulf %18, %20 : vector<128x32xf32>
    %c0_8 = arith.constant 0 : index
    %c0_9 = arith.constant 0 : index
    %22 = vector.load %arg6[%c0_8, %c0_9] : memref<32x32xbf16, #tpu.memory_space<vmem>>, vector<32x32xbf16>
    %23 = arith.truncf %21 : vector<128x32xf32> to vector<128x32xbf16>
    %cst_10 = arith.constant dense<0.000000e+00> : vector<32x128xf32>
    %24 = tpu.matmul %22, %23, %cst_10 {dimension_numbers = #tpu.dot_dimension_numbers<[1], [1], [0], [0], [0, 0, 1, 0], [], []>} : vector<32x32xbf16>, vector<128x32xbf16>, vector<32x128xf32> -> vector<32x128xf32>
    %c0_11 = arith.constant 0 : index
    %c0_12 = arith.constant 0 : index
    %25 = vector.load %arg8[%c0_11, %c0_12] : memref<32x1xf32, #tpu.memory_space<vmem>>, vector<32x1xf32>
    %26 = vector.broadcast %25 : vector<32x1xf32> to vector<32x128xf32>
    %27 = arith.addf %24, %26 : vector<32x128xf32>
    %c0_13 = arith.constant 0 : index
    %c0_14 = arith.constant 0 : index
    %c0_15 = arith.constant 0 : index
    %28 = vector.load %arg9[%c0_13, %c0_14, %c0_15] : memref<1x32x128xf32, #tpu.memory_space<vmem>>, vector<1x32x128xf32>
    %29 = vector.shape_cast %28 : vector<1x32x128xf32> to vector<32x128xf32>
    %30 = vector.shape_cast %27 : vector<32x128xf32> to vector<1x32x128xf32>
    tpu.vector_store %arg9[%c0_13, %c0_14, %c0_15], %30 {strides = array<i32>} : memref<1x32x128xf32, #tpu.memory_space<vmem>>, vector<1x32x128xf32>,
    return
  }
  func.func @transform_0(%arg0: i32, %arg1: i32) -> (i32, i32, i32) {
    %c0_i32 = arith.constant 0 : i32
    %c0_i32_0 = arith.constant 0 : i32
    %c0_i32_1 = arith.constant 0 : i32
    return %arg0, %c0_i32, %c0_i32_0 : i32, i32, i32
  }
  func.func @transform_1(%arg0: i32, %arg1: i32) -> (i32, i32, i32) {
    %c0_i32 = arith.constant 0 : i32
    %c0_i32_0 = arith.constant 0 : i32
    %c0_i32_1 = arith.constant 0 : i32
    return %arg0, %c0_i32, %c0_i32_0 : i32, i32, i32
  }
  func.func @transform_2(%arg0: i32, %arg1: i32) -> (i32, i32) {
    %c0_i32 = arith.constant 0 : i32
    %c0_i32_0 = arith.constant 0 : i32
    %c0_i32_1 = arith.constant 0 : i32
    return %c0_i32, %c0_i32_0 : i32, i32
  }
  func.func @transform_3(%arg0: i32, %arg1: i32) -> (i32, i32) {
    %c0_i32 = arith.constant 0 : i32
    %c0_i32_0 = arith.constant 0 : i32
    %c0_i32_1 = arith.constant 0 : i32
    return %c0_i32, %c0_i32_0 : i32, i32
  }
  func.func @transform_4(%arg0: i32, %arg1: i32) -> (i32, i32) {
    %c0_i32 = arith.constant 0 : i32
    %c0_i32_0 = arith.constant 0 : i32
    %c0_i32_1 = arith.constant 0 : i32
    return %c0_i32, %c0_i32_0 : i32, i32
  }
  func.func @transform_5(%arg0: i32, %arg1: i32) -> (i32, i32) {
    %c0_i32 = arith.constant 0 : i32
    %c0_i32_0 = arith.constant 0 : i32
    %c0_i32_1 = arith.constant 0 : i32
    return %c0_i32, %c0_i32_0 : i32, i32
  }
  func.func @transform_6(%arg0: i32, %arg1: i32) -> (i32, i32) {
    %c0_i32 = arith.constant 0 : i32
    %c0_i32_0 = arith.constant 0 : i32
    %c0_i32_1 = arith.constant 0 : i32
    return %c0_i32, %c0_i32_0 : i32, i32
  }
  func.func @transform_7(%arg0: i32, %arg1: i32) -> (i32, i32, i32) {
    %c0_i32 = arith.constant 0 : i32
    %c0_i32_0 = arith.constant 0 : i32
    return %arg0, %c0_i32, %arg1 : i32, i32, i32
  }
}

</mosaic_0001>

<bundles_post_ra>
// kernel: tpu_custom_call.1
= control target key start
LH: loop header
LB: loop body
LE: loop exit
PB: predicated region body
PF: predicated region fallthrough
CT: control target
= control target key end

     0   :  { %12 = vsyncpa [#allocation6], 0  ;;  %s1976_s0 = inlined_call_operand.vmem [shape: f32[2,32,128], index: 0, kind: input, shape index: {}]   ;;  %s1977_s1 = inlined_call_operand.hbm [shape: f32[2,32,128], index: 1, kind: input, shape index: {}]   ;;  %s1978_s2 = inlined_call_operand.vmem [shape: bf16[64,32], index: 2, kind: input, shape index: {}]   ;;  %s1979_s3 = inlined_call_operand.vmem [shape: bf16[32,32], index: 3, kind: input, shape index: {}]   ;;  %s1980_s4 = inlined_call_operand.vmem [shape: bf16[32,32], index: 4, kind: input, shape index: {}]   ;;  %s1981_s5 = inlined_call_operand.vmem [shape: f32[32,1], index: 5, kind: input, shape index: {}]   ;;  %s1982_s6 = inlined_call_operand.vmem [shape: f32[32,1], index: 6, kind: input, shape index: {}]   ;;  %s1983_s7 = inlined_call_operand.hbm [shape: f32[2,32,128], index: 7, kind: output, shape index: {}]  }
   0x1   :  { %14 = vsyncpa [#allocation6 + $0x1], 0 }
   0x2   :  { %15 = vsyncpa [#allocation7], 0 }
   0x3   :  { %17 = vsyncpa [#allocation7 + $0x1], 0  ;;  %s1676_s24 = smov 0   ;;  %s1678_s25 = smov 0  }
   0x4   :  { %s1680_s26 = smov 0   ;;  %s1682_s27 = smov 0  }
   0x5   :  { %s1684_s28 = smov 0   ;;  %s1686_s29 = smov 0  }
   0x6 LB: > { %s1202_s30 = sadd.s32 4294967295, %s1627_s29   ;;  %s1203_s8 = sadd.s32 4294967294, %s1627_s29   ;;  %s1627_s29 = sphi %s1686_s29, %s23_s29   ;;  %s1623_s28 = sphi %s1684_s28, %s1998_s28   ;;  %s1619_s27 = sphi %s1682_s27, %s1997_s27   ;;  %s1615_s26 = sphi %s1680_s26, %s1996_s26   ;;  %s1611_s25 = sphi %s1678_s25, %s1995_s25   ;;  %s1607_s24 = sphi %s1676_s24, %s1994_s24  }
   0x7   : > { %s35_s9 = sadd.s32 1, %s1623_s28  ;;  %s68_s10 = sadd.s32 1, %s1615_s26 }
   0x8   : > { %p37_p0 = scmp.ge.s32.totalorder %s35_s9, 2  ;;  %p75_p1 = scmp.ne.s32.totalorder %s1615_s26, %s1611_s25 }
   0x9   : > { %p76_p2 = scmp.eq.s32.totalorder %s1627_s29, 0  ;;  %p81_p3 = scmp.ne.s32.totalorder %s1611_s25, %s1607_s24 }
   0xa   : > { %s2000_s9 = smov (%p37_p0, %s35_s9), 0  ;;  %p82_p5 = scmp.eq.s32.totalorder %s1202_s30, 0 }
   0xb   : > { %p1717_p4 = por %p76_p2, %p75_p1  ;;  %s65_s12 = ssub.s32 %s1623_s28, %s2000_s9 }
   0xc   : > { %p212_p6 = scmp.eq.s32.totalorder %s1202_s30, 1  ;;  %p66_p7 = scmp.eq.s32.totalorder %s65_s12, 0 }
   0xd   : > { %p1723_p8 = por %p82_p5, %p81_p3  ;;  %p218_p10 = scmp.eq.s32.totalorder %s1203_s8, 1 }
   0xe   : > { %p1727_p9 = por %p212_p6, %p75_p1  ;;  %p1386_p13 = scmp.lt.s32.totalorder %s1627_s29, 2 }
   0xf   : > { %s1732_s15 = scalar_select %p66_p7, %s1615_s26, %s68_s10  }
  0x10   : > { %s1987_s14 = scalar_select %p1727_p9, 1, 0 }
  0x11   : > { %p1734_p11 = por %p218_p10, %p81_p3  ;;  %s261_s17 = sand.u32 1, %s1615_s26  }
  0x12   : > { %s1206_s18 = sshll.u32 %s261_s17, 5  ;;  %s1243_s19 = sshll.u32 %s1623_s28, 9 }
  0x13   : > { %s1988_s16 = scalar_select %p1734_p11, 1, 0 }
  0x14   : > { %s1745_s22 = scalar_lea.hbm %s1977_s1, %s1243_s19  ;;  %s265_s23 = scalar_lea.vmem [#allocation5], %s1206_s18 }
  0x15   : > { %s272_s30 = sshll.u32 %s265_s23, 4  ;;  %p1751_p0 = pnand %p1386_p13, %p1717_p4  ;;  %s1747_s30 = int_to_ptr.vmem [resolvable:$true] %s272_s30 }
  0x16   : > { %s1756_s10 = scalar_lea.sflag [#allocation6], %s261_s17  ;;  %s1515_s12 = scalar_lea.hbm %s1745_s22, 512 }
  0x17   : > { %p1516_p2 = scmp.ne.s32.totalorder %s1745_s22, %s1515_s12  ;;  %p1517_p3 = pneg %p1751_p0 }
  0x18   : > { %s1520_s11 = scalar_lea.hbm %s1977_s1, 1024  ;;  %p1521_p4 = scmp.lt.u32.totalorder %s1745_s22, %s1977_s1 }
  0x19   : > { %p1518_p5 = pnand %p1517_p3, %p1516_p2  ;;  %p1522_p7 = scmp.lt.u32.totalorder %s1520_s11, %s1515_s12 }
  0x1a   : > { %p1524_p13 = scmp.lt.u32.totalorder %s1515_s12, %s1745_s22 }
  0x1b   : > { %p1519_p6 = pneg %p1518_p5  ;;  %p1523_p10 = por %p1522_p7, %p1521_p4 }
  0x1d   : > { %p1525_p12 = por %p1524_p13, %p1523_p10 }
  0x1f   : > { %p1526_p1 = pnand %p1525_p12, %p1519_p6 }
  0x21   : > { %1529 = shalt.err (!%p1526_p1)
}
  0x22   : > { %s1530_s17 = scalar_lea.vmem %s1747_s30, 512  ;;  %s1629_s23 = smov [#allocation5]  }
  0x23   : > { %p1531_p2 = scmp.ne.s32.totalorder %s1747_s30, %s1530_s17  ;;  %s1535_s18 = sshll.u32 %s1629_s23, 4  ;;  %s1536_s18 = int_to_ptr.vmem [resolvable:$false] %s1535_s18 }
  0x24   : > { %s1537_s19 = scalar_lea.vmem %s1536_s18, 1024  ;;  %p1538_p9 = scmp.lt.s32.totalorder %s1747_s30, %s1536_s18 }
  0x25   : > { %p1533_p5 = pnand %p1531_p2, %p1517_p3  ;;  %p1539_p4 = scmp.lt.s32.totalorder %s1537_s19, %s1530_s17 }
  0x27   : > { %p1534_p11 = pneg %p1533_p5  ;;  %p1540_p7 = por %p1539_p4, %p1538_p9 }
  0x29   : > { %p1541_p10 = pnand %p1540_p7, %p1534_p11 }
  0x2b   : > { %1544 = shalt.err (!%p1541_p10)
}
  0x2c   : > { %s1630_s12 = smov 128   ;;  %s1631_s11 = smov 8  }
  0x2d   : > { %1381 = dma.hbm_to_vmem [thread:$0]  (!%p1751_p0), %s1745_s22, 512, %s1747_s30, %s1756_s10, %s1630_s12, %s1630_s12, %s1631_s11  }
  0x2e   : > { %p280_p12 = scmp.lt.s32.totalorder %s1627_s29, 3  ;;  %p1990_p1 = scmp.ge.s32.totalorder %s1627_s29, 1 }
  0x30   : > { %p281_p3 = pnand %p1990_p1, %p280_p12 }
  0x31   : > { %s1788_s20 = sand.u32 (!%p281_p3), 1, %s1611_s25  }
  0x32   : > { %284 = sbr.rel (%p281_p3) target bundleno = 1298 (0x512), region = 48  ;;  %s1210_s21 = sshll.u32 (!%p281_p3), %s1788_s20, 5 }
  0x33   : > { %s287_s17 = scalar_lea.sflag (!%p281_p3), [#allocation6], %s1788_s20  ;;  %s290_s23 = scalar_lea.vmem (!%p281_p3), [#allocation5], %s1210_s21 }
  0x39   : > { %1598 = dma.done.wait (%p1723_p8), %s287_s17, 512  }
  0x3a   : > { %1600 = vsyncadd (%p1723_p8), %s287_s17, 4294966784  ;;  %p326_p9 = scmp.lt.s32.totalorder %s1619_s27, 1  ;;  %v1632_v0 = vmov 0   ;;  %v342_v1 = vld [vmem:[%s290_s23] sm:$0xff]  ;;  %v343_v2 = vld [vmem:[%s290_s23 + $0x8] sm:$0xff]  ;;  %vm362_vm0 = vcmask 261120  }
  0x3b   : > { %1441 = vset.pattern.permute.xlu0 %v1632_v0  ;;  %1442 = vset.pattern.permute.xlu1 %v1632_v0  ;;  %v344_v3 = vld [vmem:[%s290_s23 + $0x10] sm:$0xff]  ;;  %v346_v4 = vpack.c.bf16 %v343_v2, %v342_v1  ;;  %v345_v5 = vld [vmem:[%s290_s23 + $0x18] sm:$0xff]  ;;  %v1443_v7 = vld [vmem:[%s1979_s3] sm:$0xff]   ;;  %s325_s13 = scalar_lea.vmem [#allocation8], %s1210_s21  ;;  %s1091_s11 = scalar_lea.sflag [#allocation7], %s1788_s20 }
  0x3c   : > { %s327_s22 = scalar_select %p326_p9, %s1619_s27, 1  ;;  %v347_v6 = vpack.c.bf16 %v345_v5, %v344_v3  ;;  %1290 = vmatprep.mubr.msk.bf16.mxu1 %vm362_vm0, %v1443_v7  ;;  %v1444_v10 = vld [vmem:[%s1979_s3 + $0x8] sm:$0xff]   ;;  %v527_v14 = vld [vmem:[%s1981_s5] sm:$0xff]  ;;  %v529_v16 = vld [vmem:[%s1981_s5 + $0x10] sm:$0xff] }
  0x3d   : > { %1286 = vmatprep.subr.bf16.mxu1 %v346_v4  ;;  %v1445_v15 = vld [vmem:[%s1978_s2] sm:$0xff]   ;;  %533 = vperm.xlu0 %1441, %v527_v14   ;;  %v528_v17 = vld [vmem:[%s1981_s5 + $0x8] sm:$0xff]  ;;  %v530_v19 = vld [vmem:[%s1981_s5 + $0x18] sm:$0xff]  ;;  %s1105_s19 = sshll.u32 %s325_s13, 4  ;;  %p1991_p11 = scmp.ne.s32.totalorder %s1987_s14, 0  ;;  %s1922_s19 = int_to_ptr.vmem [resolvable:$true] %s1105_s19 }
  0x3e   : > { %s1244_s30 = sshll.u32 %s327_s22, 5  ;;  %1287 = vmatpush3.bf16.msra.mxu1 %v346_v4  ;;  %543 = vperm.xlu1 %1442, %v529_v16   ;;  %v1446_v20 = vld [vmem:[%s1978_s2 + $0x8] sm:$0xff]   ;;  %v1447_v41 = vld [vmem:[%s1978_s2 + $0x10] sm:$0xff]   ;;  %v1448_v42 = vld [vmem:[%s1978_s2 + $0x18] sm:$0xff]   ;;  %s1545_s17 = scalar_lea.vmem %s1922_s19, 512 }
  0x3f   : > { %s330_s18 = scalar_lea.vmem %s1976_s0, %s1244_s30  ;;  %1288 = vmatprep.subr.bf16.mxu1 %v347_v6  ;;  %p1546_p8 = scmp.ne.s32.totalorder %s1922_s19, %s1545_s17 }
  0x40   : > { %v336_v8 = vld [vmem:[%s330_s18] sm:$0xff]  ;;  %v337_v9 = vld [vmem:[%s330_s18 + $0x8] sm:$0xff]  ;;  %v338_v12 = vld [vmem:[%s330_s18 + $0x10] sm:$0xff]  ;;  %s1633_s23 = smov [#allocation8]  }
  0x41   : > { %v340_v11 = vpack.c.bf16 %v337_v9, %v336_v8  ;;  %v339_v13 = vld [vmem:[%s330_s18 + $0x18] sm:$0xff]  ;;  %538 = vperm.xlu0 %1441, %v528_v17   ;;  %s1245_s18 = sshll.u32 %s1619_s27, 9  ;;  %p1547_p0 = pnand %p1546_p8, %p1991_p11 }
  0x42   : > { %1289 = vmatpush3.bf16.msra.mxu1 %v347_v6  ;;  %v341_v18 = vpack.c.bf16 %v339_v13, %v338_v12  ;;  %548 = vperm.xlu1 %1442, %v530_v19   ;;  %s1927_s27 = scalar_lea.hbm %s1983_s7, %s1245_s18  ;;  %s1549_s22 = sshll.u32 %s1633_s23, 4  ;;  %s1550_s22 = int_to_ptr.vmem [resolvable:$false] %s1549_s22 }
  0x43   : > { %1294 = vmatprep.subr.bf16.mxu1 %v340_v11  ;;  %p1548_p6 = pneg %p1547_p0  ;;  %s1551_s30 = scalar_lea.vmem %s1550_s22, 1024 }
  0x44   : > { %p1552_p13 = scmp.lt.s32.totalorder %s1922_s19, %s1550_s22  ;;  %p1553_p2 = scmp.lt.s32.totalorder %s1551_s30, %s1545_s17 }
  0x45   : > { %1291 = vmatmul.mubr.msk.bf16.vlgmr.msra.gmra.mrb[0].mxu1 %vm362_vm0, %v1444_v10 }
  0x46   : > { %1295 = vmatpush3.bf16.msra.mxu1 %v340_v11  ;;  %1298 = vmatprep.mubr.msk.bf16.mxu1 %vm362_vm0, %v1445_v15  ;;  %p1554_p5 = por %p1553_p2, %p1552_p13 }
  0x47   : > { %1296 = vmatprep.subr.bf16.mxu1 %v341_v18 }
  0x48   : > { %p1555_p4 = pnand %p1554_p5, %p1548_p6 }
  0x4a   : > { %1297 = vmatpush3.bf16.msra.mxu1 %v341_v18 }
  0x4d   : > { %1299 = vmatmul.mubr.msk.bf16.vlgmr.msra.gmra.mrb[4].mxu1 %vm362_vm0, %v1446_v20 }
  0x4e   : > { %1302 = vmatprep.mubr.msk.bf16.mxu1 %vm362_vm0, %v1447_v41 }
  0x55   : > { %1303 = vmatmul.mubr.msk.bf16.gmra.mrb[8].mxu1 %vm362_vm0, %v1448_v42 }
  0xbc   : > { %v534_v28 = vpop.permute.xlu0 %533 }
  0xbd   : > { %v544_v24 = vpop.permute.xlu1 %543 }
  0xc0   : > { %v539_v33 = vpop.permute.xlu0 %538 }
  0xc1   : > { %v549_v30 = vpop.permute.xlu1 %548 }
 0x118   : > { %v1292_v21 = vpop.f32.mrb[0].mxu1 }
 0x119   : > { %v403_v22 = vpop.f32.mrb[1].mxu1 }
 0x11a   : > { %v1293_v23 = vpop.f32.mrb[2].mxu1 }
 0x11b   : > { %v419_v25 = vpack.c.bf16 %v1293_v23, %v1292_v21  ;;  %v406_v26 = vpop.f32.mrb[3].mxu1 }
 0x11c   : > { %v418_v27 = vpack.c.bf16 %v406_v26, %v403_v22 }
 0x11e   : > { %1306 = vmatprep.subr.bf16.mxu0 %v418_v27 }
 0x11f   : > { %1307 = vmatpush3.bf16.msra.mxu0 %v418_v27 }
 0x120   : > { %v1300_v29 = vpop.f32.mrb[4].mxu1  ;;  %1308 = vmatprep.subr.bf16.mxu0 %v419_v25 }
 0x121   : > { %v496_v31 = vpop.f32.mrb[5].mxu1  ;;  %v553_v34 = vadd.f32 %v1300_v29, %v544_v24 }
 0x122   : > { %v1301_v32 = vpop.f32.mrb[6].mxu1  ;;  %v551_v37 = vadd.f32 %v534_v28, %v496_v31 }
 0x123   : > { %v554_v35 = vadd.f32 %v1301_v32, %v549_v30  ;;  %v499_v36 = vpop.f32.mrb[7].mxu1  ;;  %1309 = vmatpush3.bf16.msra.mxu0 %v419_v25 }
 0x124   : > { %v552_v38 = vadd.f32 %v539_v33, %v499_v36 }
 0x125   : > { %v556_v39 = vpack.c.bf16 %v554_v35, %v553_v34 }
 0x126   : > { %v555_v40 = vpack.c.bf16 %v552_v38, %v551_v37 }
 0x128   : > { %572 = vxpose.xlu0.c.b16.start [1/2] (short) %v555_v40, 128  ;;  %v1304_v51 = vpop.f32.mrb[8].mxu1 }
 0x129   : > { %v512_v52 = vpop.f32.mrb[9].mxu1 }
 0x12a   : > { %v1305_v53 = vpop.f32.mrb[10].mxu1 }
 0x12b   : > { %v560_v54 = vpack.c.bf16 %v1305_v53, %v1304_v51  ;;  %v515_v55 = vpop.f32.mrb[11].mxu1 }
 0x12c   : > { %573 = vxpose.xlu0.c.b16.end [2/2] (short) %v556_v39, 128  ;;  %v559_v56 = vpack.c.bf16 %v515_v55, %v512_v52 }
 0x12e   : > { %1326 = vmatprep.subr.bf16.mxu1 %v559_v56 }
 0x12f   : > { %1327 = vmatpush3.bf16.xpose.msra.mxu1 %v559_v56 }
 0x130   : > { %1328 = vmatprep.subr.bf16.mxu1 %v560_v54 }
 0x137   : > { %1329 = vmatpush3.bf16.xpose.msra.mxu1 %v560_v54 }
 0x18e   : > { %v580_v43 = vpop.trf.xlu0 }
 0x18f   : > { %1310 = vmatprep.mubr.msk.bf16.mxu0 %vm362_vm0, %v580_v43 }
 0x192   : > { %v581_v44 = vpop.trf.xlu0 }
 0x193   : > { %1311 = vmatmul.mubr.msk.bf16.vlgmr.msra.gmra.mrb[0].mxu0 %vm362_vm0, %v581_v44 }
 0x196   : > { %v582_v45 = vpop.trf.xlu0 }
 0x197   : > { %1314 = vmatprep.mubr.msk.bf16.mxu0 %vm362_vm0, %v582_v45 }
 0x19a   : > { %v583_v46 = vpop.trf.xlu0 }
 0x19b   : > { %1315 = vmatmul.mubr.msk.bf16.gmra.mrb[4].mxu0 %vm362_vm0, %v583_v46 }
 0x19e   : > { %v584_v47 = vpop.trf.xlu0 }
 0x19f   : > { %1318 = vmatprep.mubr.msk.bf16.mxu0 %vm362_vm0, %v584_v47 }
 0x1a2   : > { %v585_v48 = vpop.trf.xlu0 }
 0x1a3   : > { %1319 = vmatmul.mubr.msk.bf16.gmra.mrb[8].mxu0 %vm362_vm0, %v585_v48 }
 0x1a6   : > { %v586_v49 = vpop.trf.xlu0 }
 0x1a7   : > { %1322 = vmatprep.mubr.msk.bf16.mxu0 %vm362_vm0, %v586_v49 }
 0x1aa   : > { %v587_v50 = vpop.trf.xlu0 }
 0x1ab   : > { %1323 = vmatmul.mubr.msk.bf16.gmra.mrb[12].mxu0 %vm362_vm0, %v587_v50 }
 0x266   : > { %v1312_v57 = vpop.f32.mrb[0].mxu0 }
 0x267   : > { %v647_v58 = vpop.f32.mrb[1].mxu0 }
 0x268   : > { %710 = vmax.xlane.f32.xlu1 %v647_v58  ;;  %v1313_v59 = vpop.f32.mrb[2].mxu0 }
 0x269   : > { %v650_v60 = vpop.f32.mrb[3].mxu0 }
 0x26a   : > { %712 = vmax.xlane.f32.xlu0 %v650_v60 }
 0x26c   : > { %714 = vmax.xlane.f32.xlu1 %v1312_v57 }
 0x26e   : > { %v1316_v61 = vpop.f32.mrb[4].mxu0 }
 0x26f   : > { %v663_v62 = vpop.f32.mrb[5].mxu0 }
 0x270   : > { %716 = vmax.xlane.f32.xlu1 %v1313_v59  ;;  %v1847_v63 = vpop.f32.mrb[6].mxu0 }
 0x271   : > { %v666_v0 = vpop.f32.mrb[7].mxu0 }
 0x274   : > { %722 = vmax.xlane.f32.xlu1 %v1316_v61 }
 0x276   : > { %v1849_v1 = vpop.f32.mrb[8].mxu0 }
 0x277   : > { %v1851_v2 = vpop.f32.mrb[9].mxu0 }
 0x278   : > { %718 = vmax.xlane.f32.xlu1 %v663_v62  ;;  %v1853_v3 = vpop.f32.mrb[10].mxu0 }
 0x279   : > { %732 = vmax.xlane.f32.xlu0 %v1853_v3  ;;  %v1856_v4 = vpop.f32.mrb[11].mxu0 }
 0x27c   : > { %720 = vmax.xlane.f32.xlu1 %v666_v0 }
 0x27e   : > { %v1858_v5 = vpop.f32.mrb[12].mxu0 }
 0x27f   : > { %v1860_v6 = vpop.f32.mrb[13].mxu0 }
 0x280   : > { %724 = vmax.xlane.f32.xlu1 %v1847_v63  ;;  %v1863_v7 = vpop.f32.mrb[14].mxu0 }
 0x281   : > { %v1865_v8 = vpop.f32.mrb[15].mxu0 }
 0x282   : > { %736 = vmax.xlane.f32.xlu0 %v1865_v8 }
 0x284   : > { %726 = vmax.xlane.f32.xlu1 %v1851_v2 }
 0x286   : > { %740 = vmax.xlane.f32.xlu0 %v1863_v7 }
 0x288   : > { %728 = vmax.xlane.f32.xlu1 %v1856_v4 }
 0x28c   : > { %730 = vmax.xlane.f32.xlu1 %v1849_v1 }
 0x290   : > { %734 = vmax.xlane.f32.xlu1 %v1860_v6 }
 0x294   : > { %738 = vmax.xlane.f32.xlu1 %v1858_v5 }
 0x2f5   : > { %v711_v9 = vpop.xlane.xlu1 %710 }
 0x2f6   : > { %v742_v10 = vsub.f32 %v647_v58, %v711_v9 }
 0x2f7   : > { %v713_v11 = vpop.xlane.xlu0 %712 }
 0x2f8   : > { %v758_v12 = vmul.f32 1.442695, %v742_v10  ;;  %v743_v13 = vsub.f32 %v650_v60, %v713_v11 }
 0x2f9   : > { %v715_v14 = vpop.xlane.xlu1 %714 }
 0x2fa   : > { %1451 = vpow2.f32 %v758_v12  ;;  %v760_v15 = vmul.f32 1.442695, %v743_v13  ;;  %v744_v16 = vsub.f32 %v1312_v57, %v715_v14 }
 0x2fc   : > { %1453 = vpow2.f32 %v760_v15  ;;  %v762_v17 = vmul.f32 1.442695, %v744_v16 }
 0x2fd   : > { %v717_v18 = vpop.xlane.xlu1 %716 }
 0x2fe   : > { %1455 = vpow2.f32 %v762_v17  ;;  %v745_v19 = vsub.f32 %v1313_v59, %v717_v18  ;;  %v973_v17 = vld [vmem:[%s1982_s6] sm:$0xff]  ;;  %v975_v18 = vld [vmem:[%s1982_s6 + $0x10] sm:$0xff] }
 0x300   : > { %v764_v20 = vmul.f32 1.442695, %v745_v19  ;;  %v974_v19 = vld [vmem:[%s1982_s6 + $0x8] sm:$0xff] }
 0x301   : > { %v723_v21 = vpop.xlane.xlu1 %722 }
 0x302   : > { %1457 = vpow2.f32 %v764_v20  ;;  %v748_v23 = vsub.f32 %v1316_v61, %v723_v21  ;;  %v976_v20 = vld [vmem:[%s1982_s6 + $0x18] sm:$0xff]  ;;  %v1449_v21 = vld [vmem:[%s1980_s4] sm:$0xff]  }
 0x303   : > { %1362 = vmatprep.mubr.msk.bf16.mxu0 %vm362_vm0, %v1449_v21 }
 0x304   : > { %v1452_v22 = vpop.eup %1451  ;;  %v770_v30 = vmul.f32 1.442695, %v748_v23 }
 0x305   : > { %v719_v24 = vpop.xlane.xlu1 %718  ;;  %790 = vadd.xlane.f32.xlu1 %v1452_v22 }
 0x306   : > { %v1454_v25 = vpop.eup %1453  ;;  %v746_v26 = vsub.f32 %v663_v62, %v719_v24  ;;  %v733_v38 = vpop.xlane.xlu0 %732 }
 0x307   : > { %792 = vadd.xlane.f32.xlu0 %v1454_v25  ;;  %v822_v27 = vpack.c.bf16 %v1454_v25, %v1452_v22  ;;  %v753_v45 = vsub.f32 %v1853_v3, %v733_v38 }
 0x308   : > { %v1456_v28 = vpop.eup %1455  ;;  %v766_v29 = vmul.f32 1.442695, %v746_v26 }
 0x309   : > { %v721_v31 = vpop.xlane.xlu1 %720  ;;  %794 = vadd.xlane.f32.xlu1 %v1456_v28  ;;  %1330 = vmatprep.mubr.bf16.mxu1 %v822_v27  ;;  %v780_v51 = vmul.f32 1.442695, %v753_v45 }
 0x30a   : > { %1459 = vpow2.f32 %v766_v29  ;;  %v747_v32 = vsub.f32 %v666_v0, %v721_v31 }
 0x30b   : > { %1461 = vpow2.f32 %v770_v30 }
 0x30c   : > { %v1458_v33 = vpop.eup %1457  ;;  %v768_v34 = vmul.f32 1.442695, %v747_v32 }
 0x30d   : > { %v725_v35 = vpop.xlane.xlu1 %724  ;;  %796 = vadd.xlane.f32.xlu0 %v1458_v33  ;;  %v823_v36 = vpack.c.bf16 %v1458_v33, %v1456_v28 }
 0x30e   : > { %1463 = vpow2.f32 %v768_v34  ;;  %v749_v37 = vsub.f32 %v1847_v63, %v725_v35 }
 0x30f   : > { %1331 = vmatmul.mubr.bf16.vlgmr.msra.gmra.mrb[12].mxu1 %v823_v36  ;;  %v737_v43 = vpop.xlane.xlu0 %736 }
 0x310   : > { %v772_v39 = vmul.f32 1.442695, %v749_v37  ;;  %v755_v52 = vsub.f32 %v1865_v8, %v737_v43 }
 0x311   : > { %v727_v40 = vpop.xlane.xlu1 %726 }
 0x312   : > { %1465 = vpow2.f32 %v772_v39  ;;  %v750_v41 = vsub.f32 %v1851_v2, %v727_v40  ;;  %v784_v59 = vmul.f32 1.442695, %v755_v52 }
 0x313   : > { %v741_v55 = vpop.xlane.xlu0 %740 }
 0x314   : > { %v1460_v42 = vpop.eup %1459  ;;  %v774_v44 = vmul.f32 1.442695, %v750_v41  ;;  %v757_v60 = vsub.f32 %v1863_v7, %v741_v55 }
 0x315   : > { %v729_v46 = vpop.xlane.xlu1 %728  ;;  %798 = vadd.xlane.f32.xlu1 %v1460_v42  ;;  %v1462_v48 = vpop.eup %1461 }
 0x316   : > { %1467 = vpow2.f32 %v774_v44  ;;  %v751_v47 = vsub.f32 %v1856_v4, %v729_v46  ;;  %v788_v3 = vmul.f32 1.442695, %v757_v60 }
 0x318   : > { %v1464_v49 = vpop.eup %1463  ;;  %v776_v50 = vmul.f32 1.442695, %v751_v47 }
 0x319   : > { %v731_v53 = vpop.xlane.xlu1 %730  ;;  %802 = vadd.xlane.f32.xlu1 %v1462_v48  ;;  %800 = vadd.xlane.f32.xlu0 %v1464_v49  ;;  %v824_v54 = vpack.c.bf16 %v1464_v49, %v1460_v42 }
 0x31a   : > { %1469 = vpow2.f32 %v776_v50  ;;  %v752_v56 = vsub.f32 %v1849_v1, %v731_v53 }
 0x31b   : > { %1334 = vmatprep.mubr.bf16.mxu1 %v824_v54  ;;  %1471 = vpow2.f32 %v780_v51 }
 0x31c   : > { %v1466_v57 = vpop.eup %1465  ;;  %v778_v58 = vmul.f32 1.442695, %v752_v56 }
 0x31d   : > { %v735_v61 = vpop.xlane.xlu1 %734  ;;  %804 = vadd.xlane.f32.xlu0 %v1466_v57  ;;  %v825_v62 = vpack.c.bf16 %v1466_v57, %v1462_v48 }
 0x31e   : > { %1473 = vpow2.f32 %v778_v58  ;;  %v754_v63 = vsub.f32 %v1860_v6, %v735_v61 }
 0x31f   : > { %1335 = vmatmul.mubr.bf16.gmra.mrb[16].mxu1 %v825_v62  ;;  %1475 = vpow2.f32 %v784_v59 }
 0x320   : > { %v1468_v0 = vpop.eup %1467  ;;  %v782_v2 = vmul.f32 1.442695, %v754_v63 }
 0x321   : > { %806 = vadd.xlane.f32.xlu1 %v1468_v0  ;;  %v739_v1 = vpop.xlane.xlu1 %738 }
 0x322   : > { %1477 = vpow2.f32 %v782_v2  ;;  %v756_v4 = vsub.f32 %v1858_v5, %v739_v1 }
 0x323   : > { %1479 = vpow2.f32 %v788_v3 }
 0x324   : > { %v1470_v8 = vpop.eup %1469  ;;  %v786_v9 = vmul.f32 1.442695, %v756_v4 }
 0x325   : > { %808 = vadd.xlane.f32.xlu0 %v1470_v8  ;;  %v826_v7 = vpack.c.bf16 %v1470_v8, %v1468_v0  ;;  %v1472_v10 = vpop.eup %1471 }
 0x326   : > { %1481 = vpow2.f32 %v786_v9 }
 0x327   : > { %1338 = vmatprep.mubr.bf16.mxu1 %v826_v7 }
 0x328   : > { %v1474_v11 = vpop.eup %1473 }
 0x329   : > { %810 = vadd.xlane.f32.xlu1 %v1474_v11  ;;  %812 = vadd.xlane.f32.xlu0 %v1472_v10  ;;  %v827_v6 = vpack.c.bf16 %v1472_v10, %v1474_v11  ;;  %v1476_v12 = vpop.eup %1475 }
 0x32b   : > { %1339 = vmatmul.mubr.bf16.gmra.mrb[20].mxu1 %v827_v6 }
 0x32c   : > { %v1478_v13 = vpop.eup %1477 }
 0x32d   : > { %814 = vadd.xlane.f32.xlu1 %v1478_v13  ;;  %816 = vadd.xlane.f32.xlu0 %v1476_v12  ;;  %v828_v14 = vpack.c.bf16 %v1476_v12, %v1478_v13  ;;  %v1480_v15 = vpop.eup %1479 }
 0x32f   : > { %1342 = vmatprep.mubr.bf16.mxu1 %v828_v14 }
 0x330   : > { %v1482_v5 = vpop.eup %1481 }
 0x331   : > { %818 = vadd.xlane.f32.xlu1 %v1482_v5  ;;  %820 = vadd.xlane.f32.xlu0 %v1480_v15  ;;  %v829_v16 = vpack.c.bf16 %v1480_v15, %v1482_v5 }
 0x333   : > { %1343 = vmatmul.mubr.bf16.gmra.mrb[24].mxu1 %v829_v16 }
 0x342   : > { %979 = vperm.xlu1 %1442, %v973_v17  }
 0x346   : > { %989 = vperm.xlu1 %1442, %v975_v18  }
 0x347   : > { %984 = vperm.xlu0 %1441, %v974_v19  }
 0x34a   : > { %994 = vperm.xlu1 %1442, %v976_v20  }
 0x392   : > { %v791_v22 = vpop.xlane.xlu1 %790 }
 0x393   : > { %1483 = vrcp.f32 %v791_v22 }
 0x394   : > { %v793_v23 = vpop.xlane.xlu0 %792 }
 0x396   : > { %v795_v24 = vpop.xlane.xlu1 %794 }
 0x397   : > { %1485 = vrcp.f32 %v795_v24 }
 0x39a   : > { %v797_v25 = vpop.xlane.xlu0 %796 }
 0x39b   : > { %1487 = vrcp.f32 %v797_v25 }
 0x39c   : > { %1489 = vrcp.f32 %v793_v23 }
 0x39d   : > { %v1484_v28 = vpop.eup %1483 }
 0x3a1   : > { %v1486_v30 = vpop.eup %1485 }
 0x3a2   : > { %v799_v27 = vpop.xlane.xlu1 %798 }
 0x3a3   : > { %1491 = vrcp.f32 %v799_v27 }
 0x3a5   : > { %v1488_v32 = vpop.eup %1487 }
 0x3a6   : > { %v801_v26 = vpop.xlane.xlu0 %800  ;;  %v1490_v34 = vpop.eup %1489 }
 0x3a7   : > { %v803_v39 = vpop.xlane.xlu1 %802 }
 0x3a8   : > { %1493 = vrcp.f32 %v803_v39 }
 0x3aa   : > { %v805_v35 = vpop.xlane.xlu0 %804 }
 0x3ab   : > { %1495 = vrcp.f32 %v805_v35 }
 0x3ac   : > { %1497 = vrcp.f32 %v801_v26 }
 0x3ad   : > { %v1492_v49 = vpop.eup %1491 }
 0x3ae   : > { %v807_v45 = vpop.xlane.xlu1 %806 }
 0x3af   : > { %1499 = vrcp.f32 %v807_v45 }
 0x3b2   : > { %v809_v44 = vpop.xlane.xlu0 %808  ;;  %v1494_v52 = vpop.eup %1493 }
 0x3b5   : > { %v1496_v54 = vpop.eup %1495 }
 0x3b6   : > { %v811_v47 = vpop.xlane.xlu1 %810  ;;  %v813_v48 = vpop.xlane.xlu0 %812 }
 0x3b7   : > { %v1498_v57 = vpop.eup %1497  ;;  %1501 = vrcp.f32 %v811_v47 }
 0x3b8   : > { %1503 = vrcp.f32 %v813_v48 }
 0x3b9   : > { %1505 = vrcp.f32 %v809_v44  ;;  %v1500_v8 = vpop.eup %1499 }
 0x3ba   : > { %v815_v55 = vpop.xlane.xlu1 %814  ;;  %v817_v58 = vpop.xlane.xlu0 %816 }
 0x3bb   : > { %1507 = vrcp.f32 %v815_v55 }
 0x3be   : > { %v819_v3 = vpop.xlane.xlu1 %818  ;;  %v821_v4 = vpop.xlane.xlu0 %820 }
 0x3bf   : > { %1509 = vrcp.f32 %v819_v3 }
 0x3c0   : > { %1511 = vrcp.f32 %v821_v4 }
 0x3c1   : > { %v1502_v7 = vpop.eup %1501  ;;  %1513 = vrcp.f32 %v817_v58 }
 0x3c2   : > { %v1504_v11 = vpop.eup %1503  ;;  %v980_v39 = vpop.permute.xlu1 %979 }
 0x3c3   : > { %v1506_v12 = vpop.eup %1505 }
 0x3c5   : > { %v1508_v20 = vpop.eup %1507 }
 0x3c6   : > { %v985_v47 = vpop.permute.xlu0 %984 }
 0x3c9   : > { %v1510_v22 = vpop.eup %1509 }
 0x3ca   : > { %v1512_v24 = vpop.eup %1511 }
 0x3cb   : > { %v1514_v26 = vpop.eup %1513 }
 0x3e2   : > { %v1332_v29 = vpop.f32.mrb[12].mxu1 }
 0x3e3   : > { %v866_v31 = vpop.f32.mrb[13].mxu1  ;;  %v947_v36 = vmul.f32 %v1486_v30, %v1332_v29 }
 0x3e4   : > { %v1333_v33 = vpop.f32.mrb[14].mxu1  ;;  %v945_v40 = vmul.f32 %v1484_v28, %v866_v31 }
 0x3e5   : > { %v948_v37 = vmul.f32 %v1488_v32, %v1333_v33  ;;  %v869_v38 = vpop.f32.mrb[15].mxu1 }
 0x3e6   : > { %v946_v41 = vmul.f32 %v1490_v34, %v869_v38  ;;  %v1450_v38 = vld [vmem:[%s1980_s4 + $0x8] sm:$0xff]  }
 0x3e7   : > { %v966_v42 = vpack.c.bf16 %v948_v37, %v947_v36 }
 0x3e8   : > { %v965_v43 = vpack.c.bf16 %v946_v41, %v945_v40  ;;  %v990_v40 = vpop.permute.xlu1 %989 }
 0x3e9   : > { %v1017_v51 = vsel %vm362_vm0, %v966_v42, 0 }
 0x3ea   : > { %1366 = vmatprep.subr.msk.bf16.mxu0 %vm362_vm0, %v965_v43  ;;  %v1014_v46 = vsel %vm362_vm0, %v965_v43, 0 }
 0x3eb   : > { %1347 = vmatpush3.bf16.xpose.msra.mxu0 %v1014_v46 }
 0x3ec   : > { %1367 = vmatprep.subr.msk.bf16.mxu0 %vm362_vm0, %v966_v42  ;;  %v995_v44 = vpop.permute.xlu1 %994 }
 0x3f2   : > { %v1336_v50 = vpop.f32.mrb[16].mxu1 }
 0x3f3   : > { %v882_v53 = vpop.f32.mrb[17].mxu1  ;;  %1349 = vmatpush3.bf16.xpose.msra.mxu0 %v1017_v51  ;;  %v951_v59 = vmul.f32 %v1494_v52, %v1336_v50 }
 0x3f4   : > { %v1337_v56 = vpop.f32.mrb[18].mxu1  ;;  %v949_v62 = vmul.f32 %v1492_v49, %v882_v53 }
 0x3f5   : > { %v952_v60 = vmul.f32 %v1496_v54, %v1337_v56  ;;  %v885_v61 = vpop.f32.mrb[19].mxu1 }
 0x3f6   : > { %v950_v63 = vmul.f32 %v1498_v57, %v885_v61 }
 0x3f7   : > { %v968_v0 = vpack.c.bf16 %v952_v60, %v951_v59 }
 0x3f8   : > { %v967_v2 = vpack.c.bf16 %v950_v63, %v949_v62 }
 0x3f9   : > { %v1023_v17 = vsel %vm362_vm0, %v968_v0, 0 }
 0x3fa   : > { %1368 = vmatprep.subr.msk.bf16.mxu0 %vm362_vm0, %v967_v2  ;;  %v1020_v1 = vsel %vm362_vm0, %v967_v2, 0 }
 0x3fb   : > { %1351 = vmatpush3.bf16.xpose.msra.mxu0 %v1020_v1 }
 0x3fc   : > { %1369 = vmatprep.subr.msk.bf16.mxu0 %vm362_vm0, %v968_v0 }
 0x3fe   : > { %v1340_v9 = vpop.f32.mrb[20].mxu1 }
 0x3ff   : > { %v898_v10 = vpop.f32.mrb[21].mxu1  ;;  %v955_v13 = vmul.f32 %v1502_v7, %v1340_v9 }
 0x400   : > { %v1341_v6 = vpop.f32.mrb[22].mxu1  ;;  %v953_v5 = vmul.f32 %v1500_v8, %v898_v10 }
 0x401   : > { %v956_v14 = vmul.f32 %v1504_v11, %v1341_v6  ;;  %v901_v15 = vpop.f32.mrb[23].mxu1 }
 0x402   : > { %v954_v16 = vmul.f32 %v1506_v12, %v901_v15 }
 0x403   : > { %v970_v18 = vpack.c.bf16 %v956_v14, %v955_v13  ;;  %1353 = vmatpush3.bf16.xpose.msra.mxu0 %v1023_v17 }
 0x404   : > { %v969_v19 = vpack.c.bf16 %v954_v16, %v953_v5 }
 0x405   : > { %v1029_v35 = vsel %vm362_vm0, %v970_v18, 0 }
 0x406   : > { %v1344_v21 = vpop.f32.mrb[24].mxu1  ;;  %1370 = vmatprep.subr.msk.bf16.mxu0 %vm362_vm0, %v969_v19  ;;  %v1026_v32 = vsel %vm362_vm0, %v969_v19, 0 }
 0x407   : > { %v914_v23 = vpop.f32.mrb[25].mxu1  ;;  %v959_v27 = vmul.f32 %v1510_v22, %v1344_v21 }
 0x408   : > { %v1345_v25 = vpop.f32.mrb[26].mxu1  ;;  %v957_v30 = vmul.f32 %v1508_v20, %v914_v23 }
 0x409   : > { %v960_v28 = vmul.f32 %v1512_v24, %v1345_v25  ;;  %v917_v29 = vpop.f32.mrb[27].mxu1 }
 0x40a   : > { %v958_v31 = vmul.f32 %v1514_v26, %v917_v29 }
 0x40b   : > { %v972_v33 = vpack.c.bf16 %v960_v28, %v959_v27  ;;  %1355 = vmatpush3.bf16.xpose.msra.mxu0 %v1026_v32 }
 0x40c   : > { %v971_v34 = vpack.c.bf16 %v958_v31, %v957_v30  ;;  %1371 = vmatprep.subr.msk.bf16.mxu0 %vm362_vm0, %v970_v18 }
 0x40d   : > { %v1035_v37 = vsel %vm362_vm0, %v972_v33, 0 }
 0x40e   : > { %v1032_v36 = vsel %vm362_vm0, %v971_v34, 0 }
 0x413   : > { %1357 = vmatpush3.bf16.xpose.msra.mxu0 %v1029_v35 }
 0x414   : > { %1372 = vmatprep.subr.msk.bf16.mxu0 %vm362_vm0, %v971_v34 }
 0x41b   : > { %1359 = vmatpush3.bf16.xpose.msra.mxu0 %v1032_v36 }
 0x41c   : > { %1373 = vmatprep.subr.msk.bf16.mxu0 %vm362_vm0, %v972_v33 }
 0x423   : > { %1361 = vmatpush3.bf16.xpose.msra.mxu0 %v1035_v37 }
 0x42a   : > { %1363 = vmatmul.mubr.msk.bf16.vlgmr.msra.gmra.mrb[16].mxu0 %vm362_vm0, %v1450_v38 }
 0x4fd   : > { %v1364_v41 = vpop.f32.mrb[16].mxu0 }
 0x4fe   : > { %v1080_v42 = vadd.f32 %v1364_v41, %v990_v40  ;;  %v1071_v43 = vpop.f32.mrb[17].mxu0 }
 0x4ff   : > { %v1072_v45 = vadd.f32 %v1071_v43, %v980_v39  ;;  %v1365_v46 = vpop.f32.mrb[18].mxu0 }
 0x500   : > { %1088 = vst [vmem:[%s325_s13 + $0x10] sm:$0xff] %v1080_v42  ;;  %v1083_v48 = vadd.f32 %v1365_v46, %v995_v44  ;;  %v1074_v49 = vpop.f32.mrb[19].mxu0 }
 0x501   : > { %1086 = vst [vmem:[%s325_s13] sm:$0xff] %v1072_v45  ;;  %v1075_v50 = vadd.f32 %v1074_v49, %v985_v47 }
 0x502   : > { %1089 = vst [vmem:[%s325_s13 + $0x18] sm:$0xff] %v1083_v48 }
 0x503   : > { %1087 = vst [vmem:[%s325_s13 + $0x8] sm:$0xff] %v1075_v50 }
 0x504   : > { %1558 = shalt.err (!%p1555_p4)
}
 0x505   : > { %s1559_s8 = scalar_lea.hbm %s1927_s27, 512  ;;  %s1563_s18 = scalar_lea.hbm %s1983_s7, 1024 }
 0x506   : > { %p1560_p7 = scmp.ne.s32.totalorder %s1927_s27, %s1559_s8  ;;  %p1564_p1 = scmp.lt.u32.totalorder %s1927_s27, %s1983_s7 }
 0x507   : > { %p1565_p3 = scmp.lt.u32.totalorder %s1563_s18, %s1559_s8  ;;  %p1567_p8 = scmp.lt.u32.totalorder %s1559_s8, %s1927_s27 }
 0x508   : > { %p1561_p10 = pnand %p1560_p7, %p1991_p11 }
 0x509   : > { %p1566_p9 = por %p1565_p3, %p1564_p1 }
 0x50a   : > { %p1562_p12 = pneg %p1561_p10 }
 0x50b   : > { %p1568_p0 = por %p1567_p8, %p1566_p9 }
 0x50d   : > { %p1569_p6 = pnand %p1568_p0, %p1562_p12 }
 0x50f   : > { %1572 = shalt.err (!%p1569_p6)
}
 0x510   : > { %s1634_s17 = smov 128   ;;  %s1635_s23 = smov 8  }
 0x511   : > { %1376 = dma.vmem_to_hbm [thread:$0]  (%p1991_p11), %s1922_s19, 512, %s1927_s27, %s1091_s11, %s1634_s17, %s1634_s17, %s1635_s23  }
 0x512 PF: > { %s1120_s22 = sand.u32 1, %s1607_s24   ;;  %p1992_p13 = scmp.ne.s32.totalorder %s1988_s16, 0 }
 0x513   : > { %p1993_p2 = scmp.ge.s32.totalorder %s1627_s29, 2  ;;  %s1121_s30 = scalar_lea.sflag [#allocation7], %s1120_s22 }
 0x515   : > { %p1383_p5 = pnand %p1993_p2, %p1992_p13 }
 0x517   : > { %1602 = dma.done.wait (!%p1383_p5), %s1121_s30, 512  }
 0x518   : > { %1604 = vsyncadd (!%p1383_p5), %s1121_s30, 4294966784  ;;  %s23_s29 = sadd.s32 1, %s1627_s29   ;;  %s1994_s24 = smov %s1611_s25 }
 0x519   : > { %p20_p4 = scmp.ge.s32.totalorder %s23_s29, 4   ;;  %s1995_s25 = smov %s1615_s26 }
 0x51a   : > { %s1996_s26 = smov %s1732_s15  ;;  %s1997_s27 = smov %s1623_s28 }
 0x51b   : > { %s1998_s28 = smov %s2000_s9  ;;  %22 = sbr.rel (!%p20_p4) target bundleno = 6 (0x6), region = 101 }
 0x522   :  { %1126 = vsyncpa [#allocation6], 1 }
 0x523   :  { %1128 = vsyncpa [#allocation6 + $0x1], 1 }
 0x524   :  { %1129 = vsyncpa [#allocation7], 1 }
 0x525   :  { %1131 = vsyncpa [#allocation7 + $0x1], 1 }

</bundles_post_ra>
